<compile_context>
chip_gen: v5e
topology: v5e:2x2
jax: 0.10.0
libtpu: 0.0.40
codegen_flags: <defaults>
</compile_context>

<pallas_src>
import math

import jax
import jax.numpy as jnp
from jax.experimental import pallas as pl
from jax.experimental.pallas import tpu as pltpu

_TWO_DEG2RAD = float(2.0 * math.pi / 180.0)  # plain Python float -> lowered as a literal


def _first_harmonic_kernel(params_ref, x_ref, o_ref):
    # params_ref: SMEM (3,) -> [a, 2*b, c]
    a = params_ref[0]
    two_b = params_ref[1]
    c = params_ref[2]
    xf = x_ref[...].astype(jnp.float32)                 # per-block upcast, no extra HBM pass
    y = a * jnp.sin(xf * _TWO_DEG2RAD - two_b) + c      # == a*sin(2*(deg2rad(x)-b)) + c
    o_ref[...] = y.astype(o_ref.dtype)


def first_harmonic_fun(x, a, b, c, *, target_rows=1024):
    """Apply y = a*sin(2*(deg2rad(x)-b)) + c elementwise via Pallas.

    x: any-shape array (float preferred; ints are promoted to f32).
    a, b, c: scalar params (matching nn.Parameter(torch.randn(1))).
    """
    orig_shape = x.shape

    # TODO(synk): integer inputs follow a simple promote-to-f32 path here,
    # which may differ from PyTorch's exact type-promotion rules.
    if not jnp.issubdtype(x.dtype, jnp.floating):
        x = x.astype(jnp.float32)
    out_dtype = x.dtype

    xf = x.reshape(-1)
    total = xf.size

    # Lane-dense 2-D view: wide last dim -> long unmasked vld/vst runs and
    # fewer, larger DMA descriptors.
    if total >= (1 << 20):
        lane = 1024
    elif total >= 512:
        lane = 512
    else:
        lane = 128
    rows = pl.cdiv(total, lane)
    padded_total = rows * lane
    if padded_total != total:
        # Only the small (< lane) tail is padded; typical shapes skip this.
        xf = jnp.pad(xf, (0, padded_total - total))
    x2d = xf.reshape(rows, lane)

    # Block rows: large multiple of 8 when there is enough data, otherwise the
    # full row extent (a block spanning the whole dim is always legal).
    tile_rows = rows if rows <= target_rows else target_rows

    # Pre-fold scalars: [a, 2*b, c] delivered to SMEM via scalar prefetch.
    params = jnp.stack([
        jnp.asarray(a, jnp.float32).reshape(()),
        2.0 * jnp.asarray(b, jnp.float32).reshape(()),
        jnp.asarray(c, jnp.float32).reshape(()),
    ])

    grid = (pl.cdiv(rows, tile_rows),)
    out2d = pl.pallas_call(
        _first_harmonic_kernel,
        out_shape=jax.ShapeDtypeStruct((rows, lane), out_dtype),
        grid_spec=pltpu.PrefetchScalarGridSpec(
            num_scalar_prefetch=1,            # params -> SMEM, passed first to kernel
            grid=grid,
            in_specs=[
                pl.BlockSpec((tile_rows, lane), lambda i, params: (i, 0)),
            ],
            out_specs=pl.BlockSpec((tile_rows, lane), lambda i, params: (i, 0)),
        ),
        compiler_params=pltpu.CompilerParams(
            dimension_semantics=("parallel",),
            vmem_limit_bytes=32 << 20,        # headroom for 4 MiB double-buffered blocks on v5e
        ),
    )(params, x2d)

    out = out2d.reshape(-1)[:total].reshape(orig_shape)
    return out


if __name__ == "__main__":
    key = jax.random.PRNGKey(0)
    kx, ka, kb, kc = jax.random.split(key, 4)

    # Deterministic "parameters" (matching nn.Parameter(torch.randn(1)) shapes).
    a = jax.random.normal(ka, (1,), dtype=jnp.float32)[0]
    b = jax.random.normal(kb, (1,), dtype=jnp.float32)[0]
    c = jax.random.normal(kc, (1,), dtype=jnp.float32)[0]

    # Input: angles in degrees, small NCHW-like shape.
    x = jax.random.uniform(kx, (2, 4, 16, 16), dtype=jnp.float32,
                           minval=-180.0, maxval=180.0)

    y = first_harmonic_fun(x, a, b, c)
    y = jax.block_until_ready(y)

    # Reference in plain JAX for sanity.
    y_ref = a * jnp.sin(2.0 * (x * (jnp.pi / 180.0) - b)) + c
    assert y.shape == x.shape
    assert y.dtype == x.dtype
    assert jnp.allclose(y, y_ref, atol=1e-5, rtol=1e-5)

    print("KERNEL_OK")
</pallas_src>

<mosaic_0001>
module attributes {stable_mosaic.version = 11 : i64} {
  func.func @_first_harmonic_kernel(%arg0: i32, %arg1: memref<3xf32, #tpu.memory_space<smem>>, %arg2: memref<4x512xf32, #tpu.memory_space<vmem>>, %arg3: memref<4x512xf32, #tpu.memory_space<vmem>>) attributes {dimension_semantics = [#tpu.dimension_semantics<parallel>], iteration_bounds = array<i64: 1>, scalar_prefetch = 1 : i64, scratch_operands = 0 : i64, tpu.core_type = #tpu.core_type<tc>, window_params = [{transform_indices = @transform_0, window_bounds = array<i64: 4, 512>}, {transform_indices = @transform_1, window_bounds = array<i64: 4, 512>}]} {
    %c0 = arith.constant 0 : index
    %0 = memref.load %arg1[%c0] : memref<3xf32, #tpu.memory_space<smem>>
    %c1 = arith.constant 1 : index
    %1 = memref.load %arg1[%c1] : memref<3xf32, #tpu.memory_space<smem>>
    %c2 = arith.constant 2 : index
    %2 = memref.load %arg1[%c2] : memref<3xf32, #tpu.memory_space<smem>>
    %c0_0 = arith.constant 0 : index
    %c0_1 = arith.constant 0 : index
    %3 = vector.load %arg2[%c0_0, %c0_1] : memref<4x512xf32, #tpu.memory_space<vmem>>, vector<4x512xf32>
    %cst = arith.constant 0.0349065848 : f32
    %4 = vector.broadcast %cst : f32 to vector<4x512xf32>
    %5 = arith.mulf %3, %4 : vector<4x512xf32>
    %6 = vector.broadcast %1 : f32 to vector<4x512xf32>
    %7 = arith.subf %5, %6 : vector<4x512xf32>
    %8 = math.sin %7 : vector<4x512xf32>
    %9 = vector.broadcast %0 : f32 to vector<4x512xf32>
    %10 = arith.mulf %9, %8 : vector<4x512xf32>
    %11 = vector.broadcast %2 : f32 to vector<4x512xf32>
    %12 = arith.addf %10, %11 : vector<4x512xf32>
    %c0_2 = arith.constant 0 : index
    %c0_3 = arith.constant 0 : index
    %13 = vector.load %arg3[%c0_2, %c0_3] : memref<4x512xf32, #tpu.memory_space<vmem>>, vector<4x512xf32>
    tpu.vector_store %arg3[%c0_2, %c0_3], %12 {strides = array<i32>} : memref<4x512xf32, #tpu.memory_space<vmem>>, vector<4x512xf32>,
    return
  }
  func.func @transform_0(%arg0: i32, %arg1: memref<3xf32, #tpu.memory_space<smem>>) -> (i32, i32) {
    %c0_i32 = arith.constant 0 : i32
    %c0_i32_0 = arith.constant 0 : i32
    return %arg0, %c0_i32 : i32, i32
  }
  func.func @transform_1(%arg0: i32, %arg1: memref<3xf32, #tpu.memory_space<smem>>) -> (i32, i32) {
    %c0_i32 = arith.constant 0 : i32
    %c0_i32_0 = arith.constant 0 : i32
    return %arg0, %c0_i32 : i32, i32
  }
}

</mosaic_0001>

<bundles_post_ra>
// kernel: tpu_custom_call.1
= control target key start
LH: loop header
LB: loop body
LE: loop exit
PB: predicated region body
PF: predicated region fallthrough
CT: control target
= control target key end

     0   :  { %s461_s12 = smov [#allocation3]   ;;  %s674_s0 = inlined_call_operand.hbm [shape: f32[3], index: 0, kind: input, shape index: {}]   ;;  %s675_s1 = inlined_call_operand.hbm [shape: f32[4,512], index: 1, kind: input, shape index: {}]   ;;  %s676_s2 = inlined_call_operand.hbm [shape: f32[4,512], index: 2, kind: output, shape index: {}]  }
   0x1   :  { %s8_s11 = sshll.u32 %s674_s0, 4  ;;  %s9_s11 = int_to_ptr.hbm [resolvable:$true] %s8_s11 }
   0x2   :  { %11 = dma.hbm_to_smem %s9_s11, 16, %s461_s12, [#allocation2] }
   0x3   :  { %455 = dma.done.wait [#allocation2], 16 }
   0x4   :  { %456 = vsyncadd [#allocation2], 4294967280 }
   0x5   :  { %14 = sfence }
   0x6   :  { %15 = vsyncpa [#allocation5], 0 }
   0x7   :  { %16 = vsyncpa [#allocation6], 0  ;;  %s22_s15 = sshll.u32 %s675_s1, 4  ;;  %s462_s16 = smov [#allocation4]   ;;  %s23_s15 = int_to_ptr.hbm [resolvable:$true] %s22_s15 }
   0x8   :  { %s24_s17 = sshll.u32 %s462_s16, 4  ;;  %s25_s17 = int_to_ptr.vmem [resolvable:$true] %s24_s17 }
   0x9   :  { %27 = dma.hbm_to_vmem [thread:$0]  %s23_s15, 256, %s25_s17, [#allocation5]  }
   0xa   :  { %457 = dma.done.wait [#allocation5], 256  }
   0xb   :  { %458 = vsyncadd [#allocation5], 4294967040  ;;  %s377_s0 = sld [smem:[#allocation3 + $0x1]]  ;;  %v35_v0 = vld [vmem:[#allocation4] sm:$0xff]  ;;  %v36_v1 = vld [vmem:[#allocation4 + $0x8] sm:$0xff]  ;;  %s470_s19 = smov [#allocation7]  }
   0xc   :  { %v37_v2 = vmul.f32 0.034906585, %v35_v0  ;;  %v38_v3 = vmul.f32 0.034906585, %v36_v1  ;;  %v463_v28 = vmov 683565275  }
   0xd   :  { %v464_v30 = vmov 2475754826   ;;  %v465_v32 = vmov 2131351028   ;;  %v466_v34 = vmov 2102212464  }
   0xe   :  { %v467_v36 = vmov 920167782   ;;  %v468_v45 = vmov 1326507024   ;;  %s649_s1 = sld [smem:[#allocation3]]  ;;  %s365_s20 = sshll.u32 %s470_s19, 4  ;;  %s366_s20 = int_to_ptr.vmem [resolvable:$true] %s365_s20 }
   0xf   :  { %s651_s18 = sld [smem:[#allocation3 + $0x2]]  ;;  %s367_s23 = sshll.u32 %s676_s2, 4  ;;  %s368_s23 = int_to_ptr.hbm [resolvable:$true] %s367_s23 }
  0x11   :  { %v39_v4 = vstv %s377_s0 }
  0x12   :  { %v492_v5 = vsub.f32 %v37_v2, %v39_v4  ;;  %v494_v6 = vsub.f32 %v38_v3, %v39_v4 }
  0x14   :  { %v42_v7 = vand.u32 2147483647, %v492_v5  ;;  %v45_v8 = vand.u32 2139095040, %v492_v5  ;;  %v197_v9 = vand.u32 2147483647, %v494_v6  ;;  %v200_v10 = vand.u32 2139095040, %v494_v6 }
  0x16   :  { %v46_v11 = vshrl.u32 %v45_v8, 23  ;;  %v49_v12 = vand.u32 8388607, %v42_v7  ;;  %v201_v13 = vshrl.u32 %v200_v10, 23  ;;  %v204_v17 = vand.u32 8388607, %v197_v9 }
  0x18   :  { %v379_v14 = vadd.s32 4294967169, %v46_v11  ;;  %v50_v15 = vor.u32 8388608, %v49_v12  ;;  %v382_v16 = vadd.s32 4294967169, %v201_v13  ;;  %v205_v22 = vor.u32 8388608, %v204_v17 }
  0x1a   :  { %v52_v18 = vadd.s32 1, %v379_v14  ;;  %v207_v19 = vadd.s32 1, %v382_v16  ;;  %v504_v21 = vshll.u32 %v50_v15, 8  ;;  %v514_v39 = vshll.u32 %v205_v22, 8 }
  0x1c   :  { %vm53_vm0 = vcmp.gt.s32.totalorder %v52_v18, 0  ;;  %vm208_vm1 = vcmp.gt.s32.totalorder %v207_v19, 0  ;;  %v91_v38 = vand.u32 65535, %v504_v21  ;;  %v92_v43 = vshrl.u32 %v504_v21, 16 }
  0x1d   :  { %v54_v20 = vsel %vm53_vm0, %v52_v18, 0  ;;  %v209_v24 = vsel %vm208_vm1, %v207_v19, 0 }
  0x1e   :  { %v56_v23 = vand.u32 31, %v54_v20  ;;  %v506_v25 = vshrl.u32 %v54_v20, 5  ;;  %v508_v26 = vand.u32 31, %v209_v24  ;;  %v532_v56 = vshrl.u32 %v209_v24, 5 }
  0x20   :  { %v57_v27 = vsub.s32 32, %v56_v23  ;;  %v59_v29 = vshll.u32 %v463_v28, %v56_v23  ;;  %v62_v31 = vshll.u32 %v464_v30, %v56_v23  ;;  %v65_v33 = vshll.u32 %v465_v32, %v56_v23 }
  0x21   :  { %v68_v35 = vshll.u32 %v466_v34, %v56_v23  ;;  %v71_v37 = vshll.u32 %v467_v36, %v56_v23  ;;  %vm74_vm2 = vcmp.lt.s32.totalorder %v506_v25, 1  ;;  %vm77_vm3 = vcmp.lt.s32.totalorder %v506_v25, 4 }
  0x22   :  { %v60_v40 = vshrl.u32 %v464_v30, %v57_v27  ;;  %v63_v41 = vshrl.u32 %v465_v32, %v57_v27  ;;  %v66_v42 = vshrl.u32 %v466_v34, %v57_v27  ;;  %v69_v44 = vshrl.u32 %v467_v36, %v57_v27 }
  0x23   :  { %v72_v46 = vshrl.u32 %v468_v45, %v57_v27  ;;  %v523_v50 = vsub.s32 32, %v508_v26  ;;  %v58_v51 = vshrl.u32 %v463_v28, %v57_v27  ;;  %vm76_vm4 = vcmp.lt.s32.totalorder %v506_v25, 3 }
  0x24   :  { %v61_v47 = vor.u32 %v60_v40, %v59_v29  ;;  %v64_v48 = vor.u32 %v63_v41, %v62_v31  ;;  %v67_v49 = vor.u32 %v66_v42, %v65_v33  ;;  %v70_v52 = vor.u32 %v69_v44, %v68_v35 }
  0x25   :  { %v73_v53 = vor.u32 %v72_v46, %v71_v37  ;;  %vm75_vm5 = vcmp.lt.s32.totalorder %v506_v25, 2  ;;  %v214_v59 = vshll.u32 %v463_v28, %v508_v26  ;;  %v217_v60 = vshll.u32 %v464_v30, %v508_v26 }
  0x26   :  { %v82_v54 = vsel %vm74_vm2, %v61_v47, %v64_v48  ;;  %v86_v55 = vsel %vm74_vm2, %v64_v48, %v67_v49  ;;  %v83_v57 = vsel %vm77_vm3, %v70_v52, 920167782  ;;  %v79_v61 = vsel %vm77_vm3, %v67_v49, 2102212464 }
  0x27   :  { %v87_v58 = vsel %vm77_vm3, %v73_v53, 1326507024  ;;  %v84_v62 = vsel %vm76_vm4, %v67_v49, %v83_v57  ;;  %v215_v0 = vshrl.u32 %v464_v30, %v523_v50  ;;  %v78_v1 = vsel %vm74_vm2, %v58_v51, %v61_v47 }
  0x28   :  { %v88_v63 = vsel %vm76_vm4, %v70_v52, %v87_v58  ;;  %v85_v2 = vsel %vm75_vm5, %v82_v54, %v84_v62  ;;  %v218_v4 = vshrl.u32 %v465_v32, %v523_v50  ;;  %v80_v13 = vsel %vm76_vm4, %v64_v48, %v79_v61 }
  0x29   :  { %v89_v3 = vsel %vm75_vm5, %v86_v55, %v88_v63  ;;  %v115_v11 = vand.u32 65535, %v85_v2  ;;  %v116_v12 = vshrl.u32 %v85_v2, 16  ;;  %v557_v14 = vor.u32 %v215_v0, %v214_v59 }
  0x2a   :  { %v93_v8 = vand.u32 65535, %v89_v3  ;;  %v94_v10 = vshrl.u32 %v89_v3, 16  ;;  %v559_v15 = vor.u32 %v218_v4, %v217_v60  ;;  %v220_v16 = vshll.u32 %v465_v32, %v508_v26 }
  0x2b   :  { %v221_v20 = vshrl.u32 %v466_v34, %v523_v50  ;;  %v117_v23 = vmul.u32 %v115_v11, %v91_v38  ;;  %v118_v24 = vmul.u32 %v116_v12, %v91_v38  ;;  %v119_v27 = vmul.u32 %v115_v11, %v92_v43 }
  0x2c   :  { %v95_v17 = vmul.u32 %v93_v8, %v91_v38  ;;  %v96_v18 = vmul.u32 %v94_v10, %v91_v38  ;;  %v97_v19 = vmul.u32 %v93_v8, %v92_v43  ;;  %v98_v22 = vmul.u32 %v94_v10, %v92_v43 }
  0x2d   :  { %v120_v33 = vmul.u32 %v116_v12, %v92_v43  ;;  %v121_v37 = vshll.u32 %v118_v24, 16  ;;  %v122_v40 = vshrl.u32 %v118_v24, 16  ;;  %v123_v41 = vshll.u32 %v119_v27, 16 }
  0x2e   :  { %v99_v29 = vshll.u32 %v96_v18, 16  ;;  %v100_v30 = vshrl.u32 %v96_v18, 16  ;;  %v101_v31 = vshll.u32 %v97_v19, 16  ;;  %v102_v35 = vshrl.u32 %v97_v19, 16 }
  0x2f   :  { %v124_v42 = vshrl.u32 %v119_v27, 16  ;;  %v223_v44 = vshll.u32 %v466_v34, %v508_v26  ;;  %v469_v46 = vmov 0   ;;  %vm125_vm7 = vc.u32 %v117_v23, %v121_v37 }
  0x30   :  { %vm103_vm6 = vc.u32 %v95_v17, %v99_v29  ;;  %v105_v32 = vadd.s32 %v99_v29, %v95_v17  ;;  %v127_v38 = vadd.s32 %v121_v37, %v117_v23  ;;  %v224_v48 = vshrl.u32 %v467_v36, %v523_v50 }
  0x31   :  { %v104_v47 = vsel %vm103_vm6, 1, %v469_v46  ;;  %v126_v43 = vsel %vm125_vm7, 1, %v469_v46  ;;  %v226_v51 = vshll.u32 %v467_v36, %v508_v26  ;;  %v222_v34 = vor.u32 %v221_v20, %v220_v16 }
  0x32   :  { %v106_v49 = vadd.s32 %v104_v47, %v98_v22  ;;  %vm107_vm8 = vc.u32 %v105_v32, %v101_v31  ;;  %v128_v53 = vadd.s32 %v126_v43, %v120_v33  ;;  %vm129_vm9 = vc.u32 %v127_v38, %v123_v41 }
  0x33   :  { %v108_v52 = vsel %vm107_vm8, 1, %v469_v46  ;;  %v130_v55 = vsel %vm129_vm9, 1, %v469_v46  ;;  %v225_v57 = vor.u32 %v224_v48, %v223_v44  ;;  %v227_v58 = vshrl.u32 %v468_v45, %v523_v50 }
  0x34   :  { %v110_v54 = vadd.s32 %v108_v52, %v106_v49  ;;  %v576_v59 = vadd.s32 %v127_v38, %v123_v41  ;;  %v132_v60 = vadd.s32 %v130_v55, %v128_v53  ;;  %vm229_vm10 = vcmp.lt.s32.totalorder %v532_v56, 1 }
  0x35   :  { %vm231_vm11 = vcmp.lt.s32.totalorder %v532_v56, 3  ;;  %v228_v36 = vor.u32 %v227_v58, %v226_v51  ;;  %vm230_vm12 = vcmp.lt.s32.totalorder %v532_v56, 2  ;;  %vm232_vm13 = vcmp.lt.s32.totalorder %v532_v56, 4 }
  0x36   :  { %v111_v26 = vadd.s32 %v110_v54, %v100_v30  ;;  %v81_v61 = vsel %vm75_vm5, %v78_v1, %v80_v13  ;;  %v133_v62 = vadd.s32 %v132_v60, %v122_v40  ;;  %v237_v45 = vsel %vm229_vm10, %v557_v14, %v559_v15 }
  0x37   :  { %v238_v63 = vsel %vm232_vm13, %v225_v57, 920167782  ;;  %v241_v3 = vsel %vm229_vm10, %v559_v15, %v222_v34  ;;  %v246_v25 = vand.u32 65535, %v514_v39  ;;  %v242_v8 = vsel %vm232_vm13, %v228_v36, 1326507024 }
  0x38   :  { %v590_v0 = vadd.s32 %v111_v26, %v102_v35  ;;  %v239_v2 = vsel %vm231_vm11, %v222_v34, %v238_v63  ;;  %v134_v1 = vadd.s32 %v133_v62, %v124_v42  ;;  %v247_v10 = vshrl.u32 %v514_v39, 16 }
  0x39   :  { %v240_v4 = vsel %vm230_vm12, %v237_v45, %v239_v2  ;;  %v135_v11 = vmul.u32 %v504_v21, %v81_v61  ;;  %v243_v12 = vsel %vm231_vm11, %v225_v57, %v242_v8  ;;  %v213_v23 = vshrl.u32 %v463_v28, %v523_v50 }
  0x3a   :  { %vm137_vm14 = vc.u32 %v590_v0, %v576_v59  ;;  %v270_v13 = vand.u32 65535, %v240_v4  ;;  %v138_v16 = vadd.s32 1, %v134_v1  ;;  %v244_v17 = vsel %vm230_vm12, %v241_v3, %v243_v12 }
  0x3b   :  { %v271_v18 = vshrl.u32 %v240_v4, 16  ;;  %v248_v19 = vand.u32 65535, %v244_v17  ;;  %v249_v20 = vshrl.u32 %v244_v17, 16  ;;  %v234_v40 = vsel %vm232_vm13, %v222_v34, 2102212464 }
  0x3c   :  { %v139_v22 = vsel %vm137_vm14, %v138_v16, %v134_v1  ;;  %v274_v21 = vmul.u32 %v270_v13, %v247_v10  ;;  %v272_v31 = vmul.u32 %v270_v13, %v246_v25  ;;  %v233_v42 = vsel %vm229_vm10, %v213_v23, %v557_v14 }
  0x3d   :  { %v273_v24 = vmul.u32 %v271_v18, %v246_v25  ;;  %v140_v27 = vadd.s32 %v139_v22, %v135_v11  ;;  %v250_v29 = vmul.u32 %v248_v19, %v246_v25  ;;  %v251_v30 = vmul.u32 %v249_v20, %v246_v25 }
  0x3e   :  { %v252_v33 = vmul.u32 %v248_v19, %v247_v10  ;;  %v253_v41 = vmul.u32 %v249_v20, %v247_v10  ;;  %v275_v28 = vmul.u32 %v271_v18, %v247_v10  ;;  %v278_v50 = vshll.u32 %v274_v21, 16 }
  0x3f   :  { %v276_v35 = vshll.u32 %v273_v24, 16  ;;  %v141_v37 = vadd.s32 536870912, %v140_v27  ;;  %v254_v32 = vshll.u32 %v251_v30, 16  ;;  %v235_v48 = vsel %vm231_vm11, %v559_v15, %v234_v40 }
  0x40   :  { %v256_v44 = vshll.u32 %v252_v33, 16  ;;  %v255_v14 = vshrl.u32 %v251_v30, 16  ;;  %v277_v54 = vshrl.u32 %v273_v24, 16  ;;  %v257_v58 = vshrl.u32 %v252_v33, 16 }
  0x41   :  { %v617_v47 = vshrl.u32 %v141_v37, 30  ;;  %vm258_vm15 = vc.u32 %v250_v29, %v254_v32  ;;  %v260_v38 = vadd.s32 %v254_v32, %v250_v29  ;;  %vm280_vm0 = vc.u32 %v272_v31, %v276_v35 }
  0x42   :  { %v259_v49 = vsel %vm258_vm15, 1, %v469_v46  ;;  %v281_v43 = vsel %vm280_vm0, 1, %v469_v46  ;;  %v282_v51 = vadd.s32 %v276_v35, %v272_v31  ;;  %v279_v26 = vshrl.u32 %v274_v21, 16 }
  0x43   :  { %v143_v52 = vshll.u32 %v617_v47, 30  ;;  %v261_v53 = vadd.s32 %v259_v49, %v253_v41  ;;  %vm262_vm1 = vc.u32 %v260_v38, %v256_v44  ;;  %v283_v55 = vadd.s32 %v281_v43, %v275_v28 }
  0x44   :  { %v263_v34 = vsel %vm262_vm1, 1, %v469_v46  ;;  %vm284_vm2 = vc.u32 %v282_v51, %v278_v50  ;;  %v286_v45 = vadd.s32 %v282_v51, %v278_v50  ;;  %v236_v63 = vsel %vm230_vm12, %v233_v42, %v235_v48 }
  0x45   :  { %v144_v57 = vsub.s32 %v140_v27, %v143_v52  ;;  %v265_v60 = vadd.s32 %v263_v34, %v261_v53  ;;  %v285_v15 = vsel %vm284_vm2, 1, %v469_v46  ;;  %v290_v8 = vmul.u32 %v514_v39, %v236_v63 }
  0x46   :  { %v287_v36 = vadd.s32 %v285_v15, %v283_v55  ;;  %v136_v46 = vadd.s32 %v576_v59, %v590_v0  ;;  %v166_v33 = vsub.s32 4, %v617_v47  ;;  %vm44_vm7 = vcmp.lt.s32.totalorder %v492_v5, 0 }
  0x47   :  { %vm145_vm3 = vcmp.lt.s32.totalorder %v144_v57, 0  ;;  %v146_v61 = vsub.s32 0, %v144_v57  ;;  %v266_v62 = vadd.s32 %v265_v60, %v255_v14  ;;  %vm639_vm8 = vcmp.le.f32.partialorder %v42_v7, 0.7853982 }
  0x48   :  { %v288_v2 = vadd.s32 %v287_v36, %v277_v54  ;;  %v167_v42 = vsel %vm44_vm7, %v166_v33, %v617_v47  ;;  %vm199_vm11 = vcmp.lt.s32.totalorder %v494_v6, 0  ;;  %vm657_vm13 = vcmp.le.f32.partialorder %v197_v9, 0.7853982 }
  0x49   :  { %v147_v3 = vsel %vm145_vm3, %v146_v61, %v144_v57  ;;  %v267_v25 = vadd.s32 %v266_v62, %v257_v58  ;;  %v169_v48 = vsel %vm639_vm8, 0, %v167_v42  ;;  %vm185_vm15 = vweird.f32 %v492_v5 }
  0x4a   :  { %v148_v1 = vclz %v147_v3  ;;  %v289_v4 = vadd.s32 %v288_v2, %v279_v26  ;;  %v186_v54 = vadd.s32 3, %v169_v48  ;;  %vm340_vm3 = vweird.f32 %v494_v6 }
  0x4b   :  { %vm292_vm4 = vc.u32 %v267_v25, %v286_v45  ;;  %v291_v38 = vadd.s32 %v286_v45, %v267_v25 }
  0x4c   :  { %v380_v10 = vadd.s32 4294967294, %v148_v1  ;;  %v293_v11 = vadd.s32 1, %v289_v4  ;;  %v187_v61 = vand.u32 3, %v186_v54 }
  0x4e   :  { %vm381_vm5 = vcmp.lt.s32.totalorder %v380_v10, 0  ;;  %v294_v12 = vsel %vm292_vm4, %v293_v11, %v289_v4  ;;  %vm192_vm10 = vcmp.eq.s32.totalorder %v187_v61, 2  ;;  %vm189_vm12 = vcmp.eq.s32.totalorder %v187_v61, 0 }
  0x4f   :  { %v151_v13 = vsel %vm381_vm5, 0, %v380_v10  ;;  %v295_v16 = vadd.s32 %v294_v12, %v290_v8  ;;  %vm188_vm14 = vcmp.lt.s32.totalorder %v187_v61, 2 }
  0x50   :  { %v152_v17 = vsub.s32 32, %v151_v13  ;;  %v153_v56 = vshll.u32 %v144_v57, %v151_v13  ;;  %v156_v18 = vsub.s32 4294967266, %v151_v13 }
  0x51   :  { %v296_v19 = vadd.s32 536870912, %v295_v16 }
  0x52   :  { %v154_v20 = vshrl.u32 %v136_v46, %v152_v17  ;;  %v157_v22 = vadd.s32 127, %v156_v18 }
  0x53   :  { %v632_v23 = vshrl.u32 %v296_v19, 30 }
  0x54   :  { %v155_v24 = vor.u32 %v154_v20, %v153_v56  ;;  %v158_v39 = vshll.u32 %v157_v22, 23  ;;  %v352_v20 = vstv %s649_s1 }
  0x55   :  { %v298_v21 = vshll.u32 %v632_v23, 30  ;;  %v321_v11 = vsub.s32 4, %v632_v23 }
  0x56   :  { %v159_v27 = vor.u32 4788187, %v158_v39  ;;  %v162_v29 = vcvt.s32.f32 %v155_v24  ;;  %v355_v39 = vstv %s651_s18 }
  0x57   :  { %v299_v30 = vsub.s32 %v295_v16, %v298_v21  ;;  %v322_v18 = vsel %vm199_vm11, %v321_v11, %v632_v23 }
  0x58   :  { %v160_v59 = vand.u32 2147483647, %v159_v27  ;;  %v324_v21 = vsel %vm657_vm13, 0, %v322_v18 }
  0x59   :  { %vm300_vm6 = vcmp.lt.s32.totalorder %v299_v30, 0  ;;  %v301_v0 = vsub.s32 0, %v299_v30 }
  0x5a   :  { %v163_v31 = vmul.f32 %v162_v29, %v160_v59 }
  0x5b   :  { %v302_v35 = vsel %vm300_vm6, %v301_v0, %v299_v30 }
  0x5c   :  { %v164_v40 = vxor.u32 2147483648, %v163_v31  ;;  %v303_v41 = vclz %v302_v35 }
  0x5e   :  { %v165_v32 = vsel %vm44_vm7, %v164_v40, %v163_v31  ;;  %v383_v44 = vadd.s32 4294967294, %v303_v41  ;;  %v341_v31 = vadd.s32 3, %v324_v21 }
  0x5f   :  { %v168_v28 = vsel %vm639_vm8, %v492_v5, %v165_v32 }
  0x60   :  { %v170_v50 = vmul.f32 %v168_v28, %v168_v28  ;;  %vm384_vm9 = vcmp.lt.s32.totalorder %v383_v44, 0  ;;  %v342_v40 = vand.u32 3, %v341_v31 }
  0x61   :  { %v306_v7 = vsel %vm384_vm9, 0, %v383_v44 }
  0x62   :  { %v171_v49 = vmul.f32 -0.001358992, %v170_v50  ;;  %v178_v43 = vmul.f32 -0.00019511016, %v170_v50  ;;  %v307_v51 = vsub.s32 32, %v306_v7  ;;  %v308_v52 = vshll.u32 %v299_v30, %v306_v7 }
  0x63   :  { %v311_v14 = vsub.s32 4294967266, %v306_v7  ;;  %vm347_vm0 = vcmp.eq.s32.totalorder %v342_v40, 2  ;;  %vm344_vm1 = vcmp.eq.s32.totalorder %v342_v40, 0  ;;  %vm343_vm2 = vcmp.lt.s32.totalorder %v342_v40, 2 }
  0x64   :  { %v172_v53 = vadd.f32 0.041655596, %v171_v49  ;;  %v179_v34 = vadd.f32 0.008332121, %v178_v43  ;;  %v309_v47 = vshrl.u32 %v291_v38, %v307_v51 }
  0x65   :  { %v312_v55 = vadd.s32 127, %v311_v14 }
  0x66   :  { %v173_v57 = vmul.f32 %v172_v53, %v170_v50  ;;  %v180_v58 = vmul.f32 %v179_v34, %v170_v50  ;;  %v310_v60 = vor.u32 %v309_v47, %v308_v52 }
  0x67   :  { %v313_v15 = vshll.u32 %v312_v55, 23 }
  0x68   :  { %v174_v26 = vadd.f32 -0.4999988, %v173_v57  ;;  %v181_v36 = vadd.f32 -0.16666654, %v180_v58  ;;  %v317_v45 = vcvt.s32.f32 %v310_v60 }
  0x69   :  { %v314_v62 = vor.u32 4788187, %v313_v15 }
  0x6a   :  { %v175_v63 = vmul.f32 %v174_v26, %v170_v50  ;;  %v182_v2 = vmul.f32 %v181_v36, %v170_v50 }
  0x6b   :  { %v315_v3 = vand.u32 2147483647, %v314_v62 }
  0x6c   :  { %v176_v25 = vadd.f32 1.0, %v175_v63  ;;  %v183_v1 = vadd.f32 1.0, %v182_v2 }
  0x6d   :  { %v318_v4 = vmul.f32 %v317_v45, %v315_v3 }
  0x6e   :  { %v184_v8 = vmul.f32 %v183_v1, %v168_v28  ;;  %v193_v10 = vxor.u32 2147483648, %v176_v25 }
  0x6f   :  { %v319_v12 = vxor.u32 2147483648, %v318_v4 }
  0x70   :  { %v190_v13 = vxor.u32 2147483648, %v184_v8  ;;  %v194_v16 = vsel %vm192_vm10, %v193_v10, %v184_v8 }
  0x71   :  { %v320_v17 = vsel %vm199_vm11, %v319_v12, %v318_v4 }
  0x72   :  { %v191_v56 = vsel %vm189_vm12, %v176_v25, %v190_v13  ;;  %v323_v19 = vsel %vm657_vm13, %v494_v6, %v320_v17 }
  0x73   :  { %v195_v22 = vsel %vm188_vm14, %v191_v56, %v194_v16  ;;  %v325_v9 = vmul.f32 %v323_v19, %v323_v19 }
  0x74   :  { %v196_v24 = vsel %vm185_vm15, nan, %v195_v22 }
  0x75   :  { %v326_v27 = vmul.f32 -0.001358992, %v325_v9  ;;  %v333_v29 = vmul.f32 -0.00019511016, %v325_v9  ;;  %v353_v30 = vmul.f32 %v352_v20, %v196_v24 }
  0x77   :  { %v327_v5 = vadd.f32 0.041655596, %v326_v27  ;;  %v334_v59 = vadd.f32 0.008332121, %v333_v29  ;;  %v356_v0 = vadd.f32 %v355_v39, %v353_v30 }
  0x79   :  { %v328_v23 = vmul.f32 %v327_v5, %v325_v9  ;;  %v335_v33 = vmul.f32 %v334_v59, %v325_v9  ;;  %358 = vst [vmem:[#allocation7] sm:$0xff] %v356_v0 }
  0x7b   :  { %v329_v35 = vadd.f32 -0.4999988, %v328_v23  ;;  %v336_v37 = vadd.f32 -0.16666654, %v335_v33 }
  0x7d   :  { %v330_v41 = vmul.f32 %v329_v35, %v325_v9  ;;  %v337_v32 = vmul.f32 %v336_v37, %v325_v9 }
  0x7f   :  { %v331_v42 = vadd.f32 1.0, %v330_v41  ;;  %v338_v44 = vadd.f32 1.0, %v337_v32 }
  0x81   :  { %v339_v28 = vmul.f32 %v338_v44, %v323_v19  ;;  %v348_v50 = vxor.u32 2147483648, %v331_v42 }
  0x83   :  { %v345_v38 = vxor.u32 2147483648, %v339_v28  ;;  %v349_v48 = vsel %vm347_vm0, %v348_v50, %v339_v28 }
  0x85   :  { %v346_v7 = vsel %vm344_vm1, %v331_v42, %v345_v38 }
  0x86   :  { %v350_v49 = vsel %vm343_vm2, %v346_v7, %v349_v48 }
  0x87   :  { %v351_v43 = vsel %vm340_vm3, nan, %v350_v49 }
  0x88   :  { %v354_v51 = vmul.f32 %v352_v20, %v351_v43 }
  0x8a   :  { %v357_v52 = vadd.f32 %v355_v39, %v354_v51 }
  0x8c   :  { %359 = vst [vmem:[#allocation7 + $0x8] sm:$0xff] %v357_v52 }
  0x8d   :  { %370 = dma.vmem_to_hbm [thread:$0]  %s366_s20, 256, %s368_s23, [#allocation6]  }
  0x8e   :  { %459 = dma.done.wait [#allocation6], 256  }
  0x8f   :  { %460 = vsyncadd [#allocation6], 4294967040 }
  0x90   :  { %375 = vsyncpa [#allocation5], 1 }
  0x91   :  { %376 = vsyncpa [#allocation6], 1 }

</bundles_post_ra>
